<compile_context>
chip_gen: v5e
topology: v5e:2x2
jax: 0.10.0
libtpu: 0.0.40
codegen_flags: <defaults>
</compile_context>

<pallas_src>
import jax
import jax.numpy as jnp
from jax.experimental import pallas as pl
from jax.experimental.pallas import tpu as pltpu


# --------------------------------------------------------------------------
# Kernel
# --------------------------------------------------------------------------
def _ffn_kernel(x_ref, w13_ref, w2_ref, o_ref, acc_ref):
    # x_ref:   (tm, D)       activation row tile (constant across j)
    # w13_ref: (D, 2*tn)     fused [w1^T | w3^T] hidden tile j
    # w2_ref:  (tn, D)       w2^T hidden tile j
    # o_ref:   (tm, D)       output row tile (written at last j)
    # acc_ref: (tm, D) f32   VMEM accumulator over the hidden reduction axis
    j = pl.program_id(1)

    @pl.when(j == 0)
    def _():
        acc_ref[...] = jnp.zeros_like(acc_ref)

    # Single fused gate/up matmul, native dtype in, f32 accumulation out.
    h = jnp.dot(x_ref[...], w13_ref[...], preferred_element_type=jnp.float32)
    tn = h.shape[-1] // 2
    h1 = h[:, :tn]
    h3 = h[:, tn:]
    gated = (h1 * jax.nn.sigmoid(h1)) * h3          # SiLU gate (f32, VPU/EUP)

    # Partial down-projection for this hidden tile, accumulated in f32.
    acc_ref[...] += jnp.dot(gated.astype(w2_ref.dtype), w2_ref[...],
                            preferred_element_type=jnp.float32)

    @pl.when(j == pl.num_programs(1) - 1)
    def _():
        o_ref[...] = acc_ref[...].astype(o_ref.dtype)


# --------------------------------------------------------------------------
# Weight preparation (model-init time, NOT per forward call)
# --------------------------------------------------------------------------
def _pick_tile(dim, target, align):
    """Largest tile <= target that is a multiple of `align` and divides `dim`.
    Falls back to the full dim (block == full array dim is always legal)."""
    if dim <= target:
        return dim
    t = (target // align) * align
    while t >= align:
        if dim % t == 0:
            return t
        t -= align
    return dim


def ffn_tiles(M, H, *, tm_target=256, tn_target=512):
    # tm: multiple of 8 (sublanes); tn: multiple of 128 so 2*tn is lane-dense.
    tm = _pick_tile(M, tm_target, 8)
    tn = _pick_tile(H, tn_target, 128)
    return tm, tn


def prepare_weights(w1, w2, w3, tn):
    """Transpose + fuse weights once.

    w1, w3: (H, D); w2: (D, H)   -- PyTorch nn.Linear (out, in) layout.
    Returns:
      w13: (D, 2H) with hidden-tile-interleaved columns so that block j of
           shape (D, 2*tn) holds [w1^T[:, j*tn:(j+1)*tn] | w3^T[:, ...]].
      w2t: (H, D)
    """
    H, D = w1.shape
    assert H % tn == 0
    w1t = w1.T  # (D, H)
    w3t = w3.T  # (D, H)
    w13 = jnp.concatenate(
        [w1t.reshape(D, H // tn, tn), w3t.reshape(D, H // tn, tn)], axis=2
    ).reshape(D, 2 * H)
    w2t = w2.T  # (H, D)
    return w13, w2t


# --------------------------------------------------------------------------
# Wrapper
# --------------------------------------------------------------------------
def feed_forward_pallas(x, w13, w2t, *, tm, tn,
                        vmem_limit_bytes=64 * 1024 * 1024):
    """x: [B, S, D]; w13: [D, 2H] (fused, tile-interleaved); w2t: [H, D]."""
    B, S, D = x.shape
    H = w2t.shape[0]
    assert w13.shape == (D, 2 * H)
    M = B * S
    assert M % tm == 0, "row tile must divide B*S"
    assert H % tn == 0, "hidden tile must divide hidden_dim"

    x2 = x.reshape(M, D)

    out2 = pl.pallas_call(
        _ffn_kernel,
        out_shape=jax.ShapeDtypeStruct((M, D), x.dtype),
        grid_spec=pltpu.PrefetchScalarGridSpec(
            num_scalar_prefetch=0,
            grid=(M // tm, H // tn),
            in_specs=[
                pl.BlockSpec((tm, D), lambda i, j: (i, 0)),       # x rows
                pl.BlockSpec((D, 2 * tn), lambda i, j: (0, j)),   # fused w1|w3
                pl.BlockSpec((tn, D), lambda i, j: (j, 0)),       # w2^T
            ],
            out_specs=pl.BlockSpec((tm, D), lambda i, j: (i, 0)),
            scratch_shapes=[pltpu.VMEM((tm, D), jnp.float32)],
        ),
        compiler_params=pltpu.CompilerParams(
            dimension_semantics=("parallel", "arbitrary"),
            vmem_limit_bytes=vmem_limit_bytes,
        ),
    )(x2, w13, w2t)
    return out2.reshape(B, S, D)


# --------------------------------------------------------------------------
# Reference + test
# --------------------------------------------------------------------------
def _reference(x, w1, w2, w3):
    h1 = jnp.einsum("bsd,hd->bsh", x, w1)
    h3 = jnp.einsum("bsd,hd->bsh", x, w3)
    g = jax.nn.silu(h1) * h3
    return jnp.einsum("bsh,dh->bsd", g, w2)


if __name__ == "__main__":
    # Config (mirrors RainLLMConfig defaults at small scale):
    #   dim=32, hidden_dim=None, multiple_of=32, dropout=0.0
    #   -> hidden = 4*32 = 128; 2*128/3 = 85; rounded up to multiple_of -> 96
    dim = 32
    multiple_of = 32
    hidden_dim = 4 * dim
    hidden_dim = int(2 * hidden_dim / 3)
    hidden_dim = multiple_of * ((hidden_dim + multiple_of - 1) // multiple_of)  # 96

    B, S = 2, 8
    M = B * S

    key = jax.random.PRNGKey(0)
    kx, k1, k2, k3 = jax.random.split(key, 4)
    x = jax.random.normal(kx, (B, S, dim), dtype=jnp.float32)
    # nn.Linear(in, out, bias=False) weight shape is (out, in)
    w1 = jax.random.normal(k1, (hidden_dim, dim), dtype=jnp.float32) * (1.0 / dim ** 0.5)
    w2 = jax.random.normal(k2, (dim, hidden_dim), dtype=jnp.float32) * (1.0 / hidden_dim ** 0.5)
    w3 = jax.random.normal(k3, (hidden_dim, dim), dtype=jnp.float32) * (1.0 / dim ** 0.5)

    # Tile selection (large defaults at production shapes; clamps to full dims
    # at this toy size: tm=16, tn=96) and one-time weight fusion/transpose.
    tm, tn = ffn_tiles(M, hidden_dim)
    w13, w2t = prepare_weights(w1, w2, w3, tn)

    out = feed_forward_pallas(x, w13, w2t, tm=tm, tn=tn)
    out = jax.block_until_ready(out)

    ref = _reference(x, w1, w2, w3)
    assert out.shape == (B, S, dim)
    assert jnp.allclose(out, ref, atol=1e-4, rtol=1e-4), "mismatch vs reference"

    print("KERNEL_OK")
</pallas_src>

<mosaic_0001>
module attributes {stable_mosaic.version = 11 : i64} {
  func.func @_ffn_kernel(%arg0: i32, %arg1: i32, %arg2: memref<16x32xf32, #tpu.memory_space<vmem>>, %arg3: memref<32x192xf32, #tpu.memory_space<vmem>>, %arg4: memref<96x32xf32, #tpu.memory_space<vmem>>, %arg5: memref<16x32xf32, #tpu.memory_space<vmem>>, %arg6: memref<16x32xf32, #tpu.memory_space<vmem>>) attributes {dimension_semantics = [#tpu.dimension_semantics<parallel>, #tpu.dimension_semantics<arbitrary>], iteration_bounds = array<i64: 1, 1>, scalar_prefetch = 0 : i64, scratch_operands = 1 : i64, tpu.core_type = #tpu.core_type<tc>, window_params = [{transform_indices = @transform_0, window_bounds = array<i64: 16, 32>}, {transform_indices = @transform_1, window_bounds = array<i64: 32, 192>}, {transform_indices = @transform_2, window_bounds = array<i64: 96, 32>}, {transform_indices = @transform_3, window_bounds = array<i64: 16, 32>}]} {
    %c0_i32 = arith.constant 0 : i32
    %0 = arith.cmpi eq, %arg1, %c0_i32 : i32
    %1 = arith.extui %0 : i1 to i32
    %c0_i32_0 = arith.constant 0 : i32
    %2 = arith.cmpi ne, %1, %c0_i32_0 : i32
    scf.if %2 {
      %cst_14 = arith.constant 0.000000e+00 : f32
      %23 = vector.broadcast %cst_14 : f32 to vector<16x32xf32>
      %c0_15 = arith.constant 0 : index
      %c0_16 = arith.constant 0 : index
      %24 = vector.load %arg6[%c0_15, %c0_16] : memref<16x32xf32, #tpu.memory_space<vmem>>, vector<16x32xf32>
      tpu.vector_store %arg6[%c0_15, %c0_16], %23 {strides = array<i32>} : memref<16x32xf32, #tpu.memory_space<vmem>>, vector<16x32xf32>,
    } else {
    }
    %c0 = arith.constant 0 : index
    %c0_1 = arith.constant 0 : index
    %3 = vector.load %arg2[%c0, %c0_1] : memref<16x32xf32, #tpu.memory_space<vmem>>, vector<16x32xf32>
    %c0_2 = arith.constant 0 : index
    %c0_3 = arith.constant 0 : index
    %4 = vector.load %arg3[%c0_2, %c0_3] : memref<32x192xf32, #tpu.memory_space<vmem>>, vector<32x192xf32>
    %cst = arith.constant dense<0.000000e+00> : vector<16x192xf32>
    %5 = tpu.matmul %3, %4, %cst {dimension_numbers = #tpu.dot_dimension_numbers<[1], [0], [0], [1], [0, 0, 1, 1], [], []>} : vector<16x32xf32>, vector<32x192xf32>, vector<16x192xf32> -> vector<16x192xf32>
    %6 = vector.extract_strided_slice %5 {offsets = [0, 0], sizes = [16, 96], strides = [1, 1]} : vector<16x192xf32> to vector<16x96xf32>
    %7 = vector.extract_strided_slice %5 {offsets = [0, 96], sizes = [16, 96], strides = [1, 1]} : vector<16x192xf32> to vector<16x96xf32>
    %8 = arith.negf %6 : vector<16x96xf32>
    %9 = math.exp %8 : vector<16x96xf32>
    %cst_4 = arith.constant 1.000000e+00 : f32
    %10 = vector.broadcast %cst_4 : f32 to vector<16x96xf32>
    %11 = arith.addf %10, %9 : vector<16x96xf32>
    %12 = arith.divf %10, %11 : vector<16x96xf32>
    %13 = arith.mulf %6, %12 : vector<16x96xf32>
    %14 = arith.mulf %13, %7 : vector<16x96xf32>
    %c0_5 = arith.constant 0 : index
    %c0_6 = arith.constant 0 : index
    %15 = vector.load %arg6[%c0_5, %c0_6] : memref<16x32xf32, #tpu.memory_space<vmem>>, vector<16x32xf32>
    %c0_7 = arith.constant 0 : index
    %c0_8 = arith.constant 0 : index
    %16 = vector.load %arg4[%c0_7, %c0_8] : memref<96x32xf32, #tpu.memory_space<vmem>>, vector<96x32xf32>
    %cst_9 = arith.constant dense<0.000000e+00> : vector<16x32xf32>
    %17 = tpu.matmul %14, %16, %cst_9 {dimension_numbers = #tpu.dot_dimension_numbers<[1], [0], [0], [1], [0, 0, 1, 1], [], []>} : vector<16x96xf32>, vector<96x32xf32>, vector<16x32xf32> -> vector<16x32xf32>
    %18 = arith.addf %15, %17 : vector<16x32xf32>
    %c0_10 = arith.constant 0 : index
    %c0_11 = arith.constant 0 : index
    %19 = vector.load %arg6[%c0_10, %c0_11] : memref<16x32xf32, #tpu.memory_space<vmem>>, vector<16x32xf32>
    tpu.vector_store %arg6[%c0_10, %c0_11], %18 {strides = array<i32>} : memref<16x32xf32, #tpu.memory_space<vmem>>, vector<16x32xf32>,
    %c0_i32_12 = arith.constant 0 : i32
    %20 = arith.cmpi eq, %arg1, %c0_i32_12 : i32
    %21 = arith.extui %20 : i1 to i32
    %c0_i32_13 = arith.constant 0 : i32
    %22 = arith.cmpi ne, %21, %c0_i32_13 : i32
    scf.if %22 {
      %c0_14 = arith.constant 0 : index
      %c0_15 = arith.constant 0 : index
      %23 = vector.load %arg6[%c0_14, %c0_15] : memref<16x32xf32, #tpu.memory_space<vmem>>, vector<16x32xf32>
      %c0_16 = arith.constant 0 : index
      %c0_17 = arith.constant 0 : index
      %24 = vector.load %arg5[%c0_16, %c0_17] : memref<16x32xf32, #tpu.memory_space<vmem>>, vector<16x32xf32>
      tpu.vector_store %arg5[%c0_16, %c0_17], %23 {strides = array<i32>} : memref<16x32xf32, #tpu.memory_space<vmem>>, vector<16x32xf32>,
    } else {
    }
    return
  }
  func.func @transform_0(%arg0: i32, %arg1: i32) -> (i32, i32) {
    %c0_i32 = arith.constant 0 : i32
    %c0_i32_0 = arith.constant 0 : i32
    return %arg0, %c0_i32 : i32, i32
  }
  func.func @transform_1(%arg0: i32, %arg1: i32) -> (i32, i32) {
    %c0_i32 = arith.constant 0 : i32
    %c0_i32_0 = arith.constant 0 : i32
    return %c0_i32, %arg1 : i32, i32
  }
  func.func @transform_2(%arg0: i32, %arg1: i32) -> (i32, i32) {
    %c0_i32 = arith.constant 0 : i32
    %c0_i32_0 = arith.constant 0 : i32
    return %arg1, %c0_i32 : i32, i32
  }
  func.func @transform_3(%arg0: i32, %arg1: i32) -> (i32, i32) {
    %c0_i32 = arith.constant 0 : i32
    %c0_i32_0 = arith.constant 0 : i32
    return %arg0, %c0_i32 : i32, i32
  }
}

</mosaic_0001>

<bundles_post_ra>
// kernel: tpu_custom_call.1
= control target key start
LH: loop header
LB: loop body
LE: loop exit
PB: predicated region body
PF: predicated region fallthrough
CT: control target
= control target key end

     0   :  { %s391_s0 = inlined_call_operand.vmem [shape: f32[16,32], index: 0, kind: input, shape index: {}]   ;;  %s392_s1 = inlined_call_operand.vmem [shape: f32[32,192], index: 1, kind: input, shape index: {}]   ;;  %s393_s2 = inlined_call_operand.vmem [shape: f32[96,32], index: 2, kind: input, shape index: {}]   ;;  %s394_s3 = inlined_call_operand.hbm [shape: f32[16,32], index: 3, kind: output, shape index: {}]  }
   0x1   :  { %v30_v0 = vld [vmem:[%s392_s1 + $0x30] sm:$0xff]  ;;  %v28_v1 = vld [vmem:[%s392_s1 + $0x20] sm:$0xff]  ;;  %v31_v2 = vld [vmem:[%s392_s1 + $0x38] sm:$0xff] }
   0x2   :  { %51 = vmatpush.msra.mxu0 %v30_v0  ;;  %v26_v3 = vld [vmem:[%s392_s1 + $0x10] sm:$0xff]  ;;  %74 = vmatpush.msra.mxu1 %v31_v2  ;;  %v29_v4 = vld [vmem:[%s392_s1 + $0x28] sm:$0xff]  ;;  %v27_v5 = vld [vmem:[%s392_s1 + $0x18] sm:$0xff] }
   0x4   :  { %52 = vmatpush.msra.mxu0 %v28_v1 }
   0x5   :  { %8 = vsyncpa [#allocation4], 0  ;;  %v24_v6 = vld [vmem:[%s392_s1] sm:$0xff]  ;;  %75 = vmatpush.msra.mxu1 %v29_v4  ;;  %vm19_vm0 = vcmask 261120   ;;  %v25_v8 = vld [vmem:[%s392_s1 + $0x8] sm:$0xff]  ;;  %s275_s5 = smov 32  }
   0x6   :  { %53 = vmatpush.msra.mxu0 %v26_v3  ;;  %v22_v7 = vld [vmem:[%s391_s0] sm:$0xff]  ;;  %v23_v9 = vld [vmem:[%s391_s0 + $0x8] sm:$0xff]  ;;  %v156_v12 = vld [vmem:[%s393_s2 + $0x58] sm:$0xff]  ;;  %v276_v34 = vmov 0.0   ;;  %vm157_vm8 = vcmask 785408   ;;  %s204_s4 = sshll.u32 %s394_s3, 4  ;;  %s205_s4 = int_to_ptr.hbm [resolvable:$true] %s204_s4 }
   0x7   :  { %76 = vmatpush.msra.mxu1 %v27_v5  ;;  %v155_v13 = vld [vmem:[%s393_s2 + $0x50] sm:$0xff]  ;;  %168 = vmatpush.msra.mxu2 %v156_v12  ;;  %v154_v14 = vld [vmem:[%s393_s2 + $0x48] sm:$0xff]  ;;  %v153_v16 = vld [vmem:[%s393_s2 + $0x40] sm:$0xff]  ;;  %20 = vst.msk [vmem:[#allocation2] sm:$0xff] %vm19_vm0, %v276_v34  ;;  %s279_s1 = smov 8  }
   0x8   :  { %54 = vmatpush.msra.mxu0 %v24_v6  ;;  %224 = vmatpush.msra.mxu3 %v156_v12  ;;  %v152_v17 = vld [vmem:[%s393_s2 + $0x38] sm:$0xff]  ;;  %v151_v18 = vld [vmem:[%s393_s2 + $0x30] sm:$0xff]  ;;  %v150_v22 = vld [vmem:[%s393_s2 + $0x28] sm:$0xff]  ;;  %21 = vst.msk [vmem:[#allocation2 + $0x8] sm:$0xff] %vm19_vm0, %v276_v34 }
   0x9   :  { %216 = vmatmul.msk.f32.vlgmr.msra.gmra.mxu0 %vm19_vm0, %v22_v7  ;;  %77 = vmatpush.msra.mxu1 %v25_v8  ;;  %v149_v23 = vld [vmem:[%s393_s2 + $0x20] sm:$0xff]  ;;  %v148_v25 = vld [vmem:[%s393_s2 + $0x18] sm:$0xff]  ;;  %v147_v26 = vld [vmem:[%s393_s2 + $0x10] sm:$0xff] }
   0xa   :  { %218 = vmatmul.msk.f32.vlgmr.msra.gmra.mxu1 %vm19_vm0, %v22_v7  ;;  %169 = vmatpush.msra.mxu2 %v155_v13  ;;  %v146_v28 = vld [vmem:[%s393_s2 + $0x8] sm:$0xff]  ;;  %v145_v30 = vld [vmem:[%s393_s2] sm:$0xff]  ;;  %s277_s2 = smov [#allocation3]  }
   0xb   :  { %225 = vmatpush.msra.mxu3 %v155_v13  ;;  %s202_s28 = sshll.u32 %s277_s2, 4  ;;  %s203_s28 = int_to_ptr.vmem [resolvable:$true] %s202_s28 }
   0xc   :  { %170 = vmatpush.msra.mxu2 %v154_v14 }
   0xd   :  { %226 = vmatpush.msra.mxu3 %v154_v14 }
   0xe   :  { %171 = vmatpush.msra.mxu2 %v153_v16  ;;  %v143_v63 = vld [vmem:[#allocation2] sm:$0xff] }
   0xf   :  { %227 = vmatpush.msra.mxu3 %v153_v16  ;;  %v144_v2 = vld [vmem:[#allocation2 + $0x8] sm:$0xff] }
  0x10   :  { %172 = vmatpush.msra.mxu2 %v152_v17 }
  0x11   :  { %217 = vmatmul.msk.f32.gmra.mxu0 %vm19_vm0, %v23_v9  ;;  %228 = vmatpush.msra.mxu3 %v152_v17 }
  0x12   :  { %219 = vmatmul.msk.f32.gmra.mxu1 %vm19_vm0, %v23_v9  ;;  %173 = vmatpush.msra.mxu2 %v151_v18 }
  0x13   :  { %229 = vmatpush.msra.mxu3 %v151_v18 }
  0x14   :  { %174 = vmatpush.msra.mxu2 %v150_v22 }
  0x15   :  { %230 = vmatpush.msra.mxu3 %v150_v22 }
  0x16   :  { %175 = vmatpush.msra.mxu2 %v149_v23 }
  0x17   :  { %231 = vmatpush.msra.mxu3 %v149_v23 }
  0x18   :  { %176 = vmatpush.msra.mxu2 %v148_v25 }
  0x19   :  { %232 = vmatpush.msra.mxu3 %v148_v25 }
  0x1a   :  { %177 = vmatpush.msra.mxu2 %v147_v26 }
  0x1b   :  { %233 = vmatpush.msra.mxu3 %v147_v26 }
  0x1c   :  { %178 = vmatpush.msra.mxu2 %v146_v28 }
  0x1d   :  { %234 = vmatpush.msra.mxu3 %v146_v28 }
  0x1e   :  { %179 = vmatpush.msra.mxu2 %v145_v30 }
  0x1f   :  { %235 = vmatpush.msra.mxu3 %v145_v30 }
  0x86   :  { %v334_v10 = vpop.f32.mrf.mxu0 }
  0x87   :  { %129 = vrot.lane.b32.xlu0 %v334_v10, %s275_s5  ;;  %v79_v11 = vpop.f32.mrf.mxu1  ;;  %v220_v20 = vmul.f32 -1.442695, %v334_v10 }
  0x89   :  { %241 = vpow2.f32 %v220_v20 }
  0x8e   :  { %v346_v15 = vpop.f32.mrf.mxu0 }
  0x8f   :  { %131 = vrot.lane.b32.xlu0 %v79_v11, %s275_s5  ;;  %133 = vrot.lane.b32.xlu1 %v346_v15, %s275_s5  ;;  %v82_v19 = vpop.f32.mrf.mxu1  ;;  %v221_v21 = vmul.f32 -1.442695, %v346_v15  ;;  %v242_v24 = vpop.eup %241 }
  0x90   :  { %v91_v27 = vadd.f32 1.0, %v242_v24 }
  0x91   :  { %243 = vpow2.f32 %v221_v21 }
  0x92   :  { %245 = vrcp.f32 %v91_v27  ;;  %v104_v41 = vand.u32 2147483648, %v91_v27  ;;  %vm98_vm2 = vweird.f32 %v91_v27  ;;  %v102_v42 = vand.u32 2147483647, %v91_v27 }
  0x94   :  { %v105_v46 = vor.u32 1.1754944e-38, %v104_v41  ;;  %vm103_vm4 = vcmp.eq.f32.partialorder %v102_v42, 8.507059e+37 }
  0x97   :  { %135 = vrot.lane.b32.xlu1 %v82_v19, %s275_s5  ;;  %v244_v29 = vpop.eup %243  ;;  %s278_s5 = smov 128  }
  0x98   :  { %v92_v31 = vadd.f32 1.0, %v244_v29  ;;  %v246_v32 = vpop.eup %245 }
  0x99   :  { %v94_v33 = vmul.f32 %v246_v32, %v91_v27  ;;  %vm99_vm1 = vweird.f32 %v246_v32 }
  0x9a   :  { %247 = vrcp.f32 %v92_v31  ;;  %vm100_vm3 = vmor %vm98_vm2, %vm99_vm1  ;;  %v119_v49 = vand.u32 2147483648, %v92_v31  ;;  %vm113_vm6 = vweird.f32 %v92_v31  ;;  %v117_v51 = vand.u32 2147483647, %v92_v31 }
  0x9b   :  { %v95_v35 = vsub.f32 1.0, %v94_v33 }
  0x9c   :  { %v120_v57 = vor.u32 1.1754944e-38, %v119_v49  ;;  %vm118_vm9 = vcmp.eq.f32.partialorder %v117_v51, 8.507059e+37 }
  0x9d   :  { %v96_v37 = vmul.f32 %v246_v32, %v95_v35 }
  0x9f   :  { %v97_v39 = vadd.f32 %v246_v32, %v96_v37 }
  0xa0   :  { %v248_v36 = vpop.eup %247 }
  0xa1   :  { %v109_v38 = vmul.f32 %v248_v36, %v92_v31  ;;  %v101_v44 = vsel %vm100_vm3, %v246_v32, %v97_v39  ;;  %vm114_vm5 = vweird.f32 %v248_v36 }
  0xa2   :  { %v106_v47 = vsel %vm103_vm4, %v105_v46, %v101_v44  ;;  %vm115_vm7 = vmor %vm113_vm6, %vm114_vm5 }
  0xa3   :  { %v110_v40 = vsub.f32 1.0, %v109_v38  ;;  %v123_v50 = vmul.f32 %v106_v47, %v334_v10 }
  0xa5   :  { %v111_v45 = vmul.f32 %v248_v36, %v110_v40 }
  0xa7   :  { %v112_v48 = vadd.f32 %v248_v36, %v111_v45 }
  0xa9   :  { %v116_v55 = vsel %vm115_vm7, %v248_v36, %v112_v48 }
  0xaa   :  { %v121_v58 = vsel %vm118_vm9, %v120_v57, %v116_v55 }
  0xab   :  { %v124_v59 = vmul.f32 %v121_v58, %v346_v15 }
  0xf9   :  { %v130_v43 = vpop.permute.xlu0 %129 }
 0x101   :  { %v132_v52 = vpop.permute.xlu0 %131  ;;  %v134_v53 = vpop.permute.xlu1 %133 }
 0x102   :  { %v137_v54 = vsel %vm19_vm0, %v130_v43, %v132_v52 }
 0x103   :  { %v141_v56 = vmul.f32 %v137_v54, %v123_v50 }
 0x105   :  { %222 = vmatmul.msk.f32.vlgmr.msra.gmra.mxu2 %vm157_vm8, %v141_v56 }
 0x109   :  { %v136_v60 = vpop.permute.xlu1 %135 }
 0x10a   :  { %v138_v61 = vsel %vm19_vm0, %v134_v53, %v136_v60 }
 0x10b   :  { %v142_v62 = vmul.f32 %v138_v61, %v124_v59 }
 0x10d   :  { %223 = vmatmul.msk.f32.vlgmr.msra.gmra.mxu3 %vm157_vm8, %v142_v62 }
 0x188   :  { %v181_v0 = vpop.f32.mrf.mxu2 }
 0x189   :  { %v187_v1 = vadd.f32 %v181_v0, %v143_v63 }
 0x18b   :  { %189 = vst.msk [vmem:[#allocation2] sm:$0xff] %vm19_vm0, %v187_v1 }
 0x190   :  { %v184_v3 = vpop.f32.mrf.mxu3 }
 0x191   :  { %v188_v4 = vadd.f32 %v184_v3, %v144_v2 }
 0x192   :  { %v194_v5 = vld [vmem:[#allocation2] sm:$0xff] }
 0x193   :  { %190 = vst.msk [vmem:[#allocation2 + $0x8] sm:$0xff] %vm19_vm0, %v188_v4 }
 0x194   :  { %196 = vst.msk [vmem:[#allocation3] sm:$0xff] %vm19_vm0, %v194_v5 }
 0x19a   :  { %v195_v6 = vld [vmem:[#allocation2 + $0x8] sm:$0xff] }
 0x19b   :  { %197 = vst.msk [vmem:[#allocation3 + $0x8] sm:$0xff] %vm19_vm0, %v195_v6 }
 0x19c   :  { %210 = dma.vmem_to_hbm [thread:$0]  %s203_s28, 256, %s205_s4, [#allocation4], %s278_s5, %s278_s5, %s279_s1  }
 0x19d   :  { %273 = dma.done.wait [#allocation4], 256  }
 0x19e   :  { %274 = vsyncadd [#allocation4], 4294967040 }
 0x19f   :  { %215 = vsyncpa [#allocation4], 1 }

</bundles_post_ra>
